<compile_context>
chip_gen: v7x
topology: tpu7x:2x2x1
jax: 0.10.0
libtpu: 0.0.40
codegen_flags: <defaults>
</compile_context>

<pallas_src>
import numpy as np
import jax
import jax.numpy as jnp
from jax.experimental import pallas as pl
from jax.experimental.pallas import tpu as pltpu

N_FFT = 512
WIN_LENGTH = 128
HOP = 50
N_FREQ_FULL = N_FFT // 2 + 1                       # 257 (onesided)
N_FREQ_CROP = int(20 / 100 * N_FREQ_FULL + 10)     # 61, matches image[:, :, :int(...), :]
FREQ_PAD = 128                                     # lane-aligned packed output width
SIN_LANE_OFF = 64                                  # sin bins live in lanes 64..124
TM_MAX = 2048                                      # frame rows per grid step (sweepable)


def _round_up(a, b):
    return ((a + b - 1) // b) * b


def _spectrogram_kernel(frames_ref, basis_ref, out_ref):
    """One packed DFT matmul on the MXU, XLU half-roll, magnitude/clip/scale on VPU."""
    f = frames_ref[...]                                     # (TM, 512) bf16
    b = basis_ref[...]                                      # (512, 128) bf16 packed cos|sin
    z = jnp.dot(f, b, preferred_element_type=jnp.float32)   # (TM, 128) f32
    # lanes 0..60: real part, lanes 64..124: imag part.  A half-rotation (64 of 128
    # lanes) brings the imag bins onto lanes 0..60; lanes >= 61 become garbage but
    # are sliced off by the wrapper.
    zr = pltpu.roll(z, shift=SIN_LANE_OFF, axis=1)
    mag = jnp.sqrt(z * z + zr * zr)                         # power=1 -> magnitude
    out_ref[...] = jnp.clip(mag, 0.0, 10000.0) * (1.0 / 1000.0)


def _make_packed_basis():
    # torch.hann_window(128, periodic=True), center-padded to n_fft like torch.stft.
    n_w = np.arange(WIN_LENGTH)
    hann = 0.5 * (1.0 - np.cos(2.0 * np.pi * n_w / WIN_LENGTH))
    win = np.zeros(N_FFT, dtype=np.float64)
    lpad = (N_FFT - WIN_LENGTH) // 2
    win[lpad:lpad + WIN_LENGTH] = hann

    # Only the first 61 frequency bins survive the crop, so only build those.
    nvec = np.arange(N_FFT)[:, None]
    kvec = np.arange(N_FREQ_CROP)[None, :]
    ang = 2.0 * np.pi * nvec * kvec / N_FFT
    cosb = win[:, None] * np.cos(ang)                       # (512, 61) real basis
    sinb = -win[:, None] * np.sin(ang)                      # (512, 61) imag basis (sign irrelevant)

    basis = np.zeros((N_FFT, FREQ_PAD), dtype=np.float32)
    basis[:, :N_FREQ_CROP] = cosb
    basis[:, SIN_LANE_OFF:SIN_LANE_OFF + N_FREQ_CROP] = sinb
    return jnp.asarray(basis, dtype=jnp.bfloat16)


def transform50s(x):
    """x: (N, C, T) float waveform -> (N, C, 61, 1 + T//50) float32 spectrogram."""
    n, c, t = x.shape
    if t <= N_FFT // 2:
        raise ValueError(f"reflect pad of {N_FFT // 2} requires T > {N_FFT // 2}, got T={t}")

    # torch.stft center=True, pad_mode="reflect"
    xp = jnp.pad(x, ((0, 0), (0, 0), (N_FFT // 2, N_FFT // 2)), mode="reflect")
    n_frames = 1 + t // HOP
    idx = jnp.arange(n_frames)[:, None] * HOP + jnp.arange(N_FFT)[None, :]
    frames = xp[:, :, idx]                                  # (N, C, F, 512)
    frames = frames.reshape(n * c * n_frames, N_FFT).astype(jnp.bfloat16)

    m = frames.shape[0]
    tm = min(TM_MAX, _round_up(m, 8))                       # big tiles; shrink only for tiny inputs
    m_pad = _round_up(m, tm)
    if m_pad != m:
        frames = jnp.pad(frames, ((0, m_pad - m), (0, 0)))  # fuses with the gather/convert

    basis = _make_packed_basis()

    out = pl.pallas_call(
        _spectrogram_kernel,
        out_shape=jax.ShapeDtypeStruct((m_pad, FREQ_PAD), jnp.float32),
        grid_spec=pltpu.PrefetchScalarGridSpec(
            num_scalar_prefetch=0,
            grid=(m_pad // tm,),
            in_specs=[
                pl.BlockSpec((tm, N_FFT), lambda i: (i, 0)),
                pl.BlockSpec((N_FFT, FREQ_PAD), lambda i: (0, 0)),  # grid-invariant, DMA'd once
            ],
            out_specs=pl.BlockSpec((tm, FREQ_PAD), lambda i: (i, 0)),
        ),
        compiler_params=pltpu.CompilerParams(dimension_semantics=("parallel",)),
    )(frames, basis)

    # Single fused crop + reshape + transpose over the small (m, 61) result.
    out = out[:m, :N_FREQ_CROP].reshape(n, c, n_frames, N_FREQ_CROP)
    image = jnp.transpose(out, (0, 1, 3, 2))                # (N, C, freq, time) like torchaudio
    return image


if __name__ == "__main__":
    key = jax.random.PRNGKey(0)
    # small waveform batch: 2 examples, 4 channels, 400 samples -> 9 STFT frames
    x = jax.random.normal(key, (2, 4, 400), dtype=jnp.float32)
    image = transform50s(x)
    jax.block_until_ready(image)
    assert image.shape == (2, 4, N_FREQ_CROP, 1 + 400 // HOP), image.shape
    assert bool(jnp.all(jnp.isfinite(image)))
    print("KERNEL_OK")
</pallas_src>

<mosaic_0001>
module attributes {stable_mosaic.version = 11 : i64} {
  func.func @_spectrogram_kernel(%arg0: i32, %arg1: memref<72x512xbf16, #tpu.memory_space<vmem>>, %arg2: memref<512x128xbf16, #tpu.memory_space<vmem>>, %arg3: memref<72x128xf32, #tpu.memory_space<vmem>>) attributes {dimension_semantics = [#tpu.dimension_semantics<parallel>], iteration_bounds = array<i64: 1>, scalar_prefetch = 0 : i64, scratch_operands = 0 : i64, tpu.core_type = #tpu.core_type<tc>, window_params = [{transform_indices = @transform_0, window_bounds = array<i64: 72, 512>}, {pipeline_mode = #tpu.pipeline_mode<synchronous>, transform_indices = @transform_1, window_bounds = array<i64: 512, 128>}, {transform_indices = @transform_2, window_bounds = array<i64: 72, 128>}]} {
    %c0 = arith.constant 0 : index
    %c0_0 = arith.constant 0 : index
    %0 = vector.load %arg1[%c0, %c0_0] : memref<72x512xbf16, #tpu.memory_space<vmem>>, vector<72x512xbf16>
    %c0_1 = arith.constant 0 : index
    %c0_2 = arith.constant 0 : index
    %1 = vector.load %arg2[%c0_1, %c0_2] : memref<512x128xbf16, #tpu.memory_space<vmem>>, vector<512x128xbf16>
    %cst = arith.constant dense<0.000000e+00> : vector<72x128xf32>
    %2 = tpu.matmul %0, %1, %cst {dimension_numbers = #tpu.dot_dimension_numbers<[1], [0], [0], [1], [0, 0, 1, 1], [], []>} : vector<72x512xbf16>, vector<512x128xbf16>, vector<72x128xf32> -> vector<72x128xf32>
    %c64_i32 = arith.constant 64 : i32
    %3 = tpu.dynamic_rotate %2 by %c64_i32 dim 1 : vector<72x128xf32>, i32 -> vector<72x128xf32>
    %4 = arith.mulf %2, %2 : vector<72x128xf32>
    %5 = arith.mulf %3, %3 : vector<72x128xf32>
    %6 = arith.addf %4, %5 : vector<72x128xf32>
    %7 = math.sqrt %6 : vector<72x128xf32>
    %cst_3 = arith.constant 0.000000e+00 : f32
    %cst_4 = arith.constant 1.000000e+04 : f32
    %8 = vector.broadcast %cst_3 : f32 to vector<72x128xf32>
    %9 = arith.maximumf %8, %7 : vector<72x128xf32>
    %10 = vector.broadcast %cst_4 : f32 to vector<72x128xf32>
    %11 = arith.minimumf %10, %9 : vector<72x128xf32>
    %cst_5 = arith.constant 1.000000e-03 : f32
    %12 = vector.broadcast %cst_5 : f32 to vector<72x128xf32>
    %13 = arith.mulf %11, %12 : vector<72x128xf32>
    %c0_6 = arith.constant 0 : index
    %c0_7 = arith.constant 0 : index
    %14 = vector.load %arg3[%c0_6, %c0_7] : memref<72x128xf32, #tpu.memory_space<vmem>>, vector<72x128xf32>
    tpu.vector_store %arg3[%c0_6, %c0_7], %13 {strides = array<i32>} : memref<72x128xf32, #tpu.memory_space<vmem>>, vector<72x128xf32>,
    return
  }
  func.func @transform_0(%arg0: i32) -> (i32, i32) {
    %c0_i32 = arith.constant 0 : i32
    %c0_i32_0 = arith.constant 0 : i32
    return %arg0, %c0_i32 : i32, i32
  }
  func.func @transform_1(%arg0: i32) -> (i32, i32) {
    %c0_i32 = arith.constant 0 : i32
    %c0_i32_0 = arith.constant 0 : i32
    %c0_i32_1 = arith.constant 0 : i32
    return %c0_i32, %c0_i32_0 : i32, i32
  }
  func.func @transform_2(%arg0: i32) -> (i32, i32) {
    %c0_i32 = arith.constant 0 : i32
    %c0_i32_0 = arith.constant 0 : i32
    return %arg0, %c0_i32 : i32, i32
  }
}

</mosaic_0001>

<bundles_post_ra>
// kernel: tpu_custom_call.1
= control target key start
LH: loop header
LB: loop body
LE: loop exit
PB: predicated region body
PF: predicated region fallthrough
CT: control target
= control target key end

     0   :  { %7 = vsyncpa [#allocation3], 0  ;;  %s1135_s0 = inlined_call_operand.hbm [shape: bf16[72,512], index: 0, kind: input, shape index: {}]   ;;  %s1136_s1 = inlined_call_operand.hbm [shape: bf16[512,128], index: 1, kind: input, shape index: {}]   ;;  %s1137_s2 = inlined_call_operand.hbm [shape: f32[72,128], index: 2, kind: output, shape index: {}]  }
   0x1   :  { %8 = vsyncpa [#allocation6], 0 }
   0x2   :  { %9 = vsyncpa [#allocation4], 0  ;;  %s1018_s9 = smov [#allocation2]   ;;  %s946_s13 = scalar_lea.hbm %s1135_s0, 2304 }
   0x3   :  { %s15_s10 = sshll.u32 %s1018_s9, 4  ;;  %p947_p0 = scmp.ne.s32.totalorder %s1135_s0, %s946_s13  ;;  %s16_s10 = int_to_ptr.vmem [resolvable:$true] %s15_s10 }
   0x4   :  { %p950_p1 = scmp.lt.u32.totalorder %s946_s13, %s1135_s0 }
   0x6   :  { %p952_p2 = pnand %p950_p1, %p947_p0 }
   0x8   :  { %955 = shalt.err (!%p952_p2)
}
   0x9   :  { %s956_s18 = scalar_lea.vmem %s16_s10, 2304  ;;  %p961_p4 = scmp.lt.s32.totalorder %s16_s10, %s16_s10 }
   0xa   :  { %p957_p3 = scmp.ne.s32.totalorder %s16_s10, %s956_s18  ;;  %p962_p5 = scmp.lt.s32.totalorder %s956_s18, %s956_s18 }
   0xc   :  { %p963_p6 = por %p962_p5, %p961_p4 }
   0xe   :  { %p964_p7 = pnand %p963_p6, %p957_p3 }
  0x10   :  { %967 = shalt.err (!%p964_p7)
}
  0x11   :  { %s1019_s19 = smov 256   ;;  %s1020_s20 = smov 16  }
  0x12   :  { %21 = dma.hbm_to_vmem [thread:$0]  %s1135_s0, 2304, %s16_s10, [#allocation3], %s1019_s19, %s1019_s19, %s1020_s20  }
  0x13   :  { %s1021_s23 = smov [#allocation5]   ;;  %s968_s27 = scalar_lea.hbm %s1136_s1, 4096 }
  0x14   :  { %s27_s24 = sshll.u32 %s1021_s23, 4  ;;  %p969_p8 = scmp.ne.s32.totalorder %s1136_s1, %s968_s27  ;;  %s28_s24 = int_to_ptr.vmem [resolvable:$true] %s27_s24 }
  0x15   :  { %p972_p9 = scmp.lt.u32.totalorder %s968_s27, %s1136_s1 }
  0x17   :  { %p974_p10 = pnand %p972_p9, %p969_p8 }
  0x19   :  { %977 = shalt.err (!%p974_p10)
}
  0x1a   :  { %s978_s4 = scalar_lea.vmem %s28_s24, 4096  ;;  %p983_p12 = scmp.lt.s32.totalorder %s28_s24, %s28_s24 }
  0x1b   :  { %p979_p11 = scmp.ne.s32.totalorder %s28_s24, %s978_s4  ;;  %p984_p13 = scmp.lt.s32.totalorder %s978_s4, %s978_s4 }
  0x1d   :  { %p985_p0 = por %p984_p13, %p983_p12 }
  0x1f   :  { %p986_p1 = pnand %p985_p0, %p979_p11 }
  0x21   :  { %989 = shalt.err (!%p986_p1)
}
  0x22   :  { %s1022_s0 = smov 64   ;;  %s1023_s5 = smov 4  }
  0x23   :  { %33 = dma.hbm_to_vmem [thread:$0]  %s1136_s1, 4096, %s28_s24, [#allocation6], %s1022_s0, %s1022_s0, %s1023_s5  }
  0x24   :  { %1012 = dma.done.wait [#allocation3], 2304  }
  0x25   :  { %1013 = vsyncadd [#allocation3], 4294964992 }
  0x26   :  { %1014 = dma.done.wait [#allocation6], 4096  }
  0x27   :  { %1015 = vsyncadd [#allocation6], 4294963200  ;;  %v868_v0 = vld [vmem:[#allocation5 + $0x40] sm:$0xff]   ;;  %v872_v4 = vld [vmem:[#allocation5 + $0x48] sm:$0xff]   ;;  %s1024_s1 = smov [#allocation7]  }
  0x28   :  { %v869_v1 = vld [vmem:[#allocation5 + $0xc0] sm:$0xff]   ;;  %767 = vmatprep.subr.bf16.mxu0 %v868_v0  ;;  %v873_v5 = vld [vmem:[#allocation5 + $0xc8] sm:$0xff]   ;;  %v876_v8 = vld [vmem:[#allocation5 + $0x50] sm:$0xff]   ;;  %s702_s8 = sshll.u32 %s1024_s1, 4  ;;  %s703_s8 = int_to_ptr.vmem [resolvable:$true] %s702_s8 }
  0x29   :  { %v870_v2 = vld [vmem:[#allocation5] sm:$0xff]   ;;  %813 = vmatprep.subr.bf16.mxu1 %v869_v1  ;;  %v874_v6 = vld [vmem:[#allocation5 + $0x8] sm:$0xff]   ;;  %v877_v9 = vld [vmem:[#allocation5 + $0xd0] sm:$0xff]   ;;  %s990_s9 = scalar_lea.vmem %s703_s8, 1152  ;;  %p995_p3 = scmp.lt.s32.totalorder %s703_s8, %s703_s8 }
  0x2a   :  { %v871_v3 = vld [vmem:[#allocation5 + $0x80] sm:$0xff]   ;;  %768 = vmatpush3.bf16.msra.mxu0 %v870_v2  ;;  %v875_v7 = vld [vmem:[#allocation5 + $0x88] sm:$0xff]   ;;  %v878_v10 = vld [vmem:[#allocation5 + $0x10] sm:$0xff]   ;;  %p991_p2 = scmp.ne.s32.totalorder %s703_s8, %s990_s9  ;;  %p996_p4 = scmp.lt.s32.totalorder %s990_s9, %s990_s9 }
  0x2b   :  { %814 = vmatpush3.bf16.msra.mxu1 %v871_v3  ;;  %769 = vmatprep.subr.bf16.mxu0 %v872_v4  ;;  %v879_v11 = vld [vmem:[#allocation5 + $0x90] sm:$0xff]   ;;  %v880_v12 = vld [vmem:[#allocation5 + $0x58] sm:$0xff]   ;;  %v884_v16 = vld [vmem:[#allocation5 + $0x60] sm:$0xff]  }
  0x2c   :  { %815 = vmatprep.subr.bf16.mxu1 %v873_v5  ;;  %v881_v13 = vld [vmem:[#allocation5 + $0xd8] sm:$0xff]   ;;  %v885_v17 = vld [vmem:[#allocation5 + $0xe0] sm:$0xff]   ;;  %v888_v20 = vld [vmem:[#allocation5 + $0x68] sm:$0xff]   ;;  %p997_p5 = por %p996_p4, %p995_p3 }
  0x2d   :  { %v882_v14 = vld [vmem:[#allocation5 + $0x18] sm:$0xff]   ;;  %v886_v18 = vld [vmem:[#allocation5 + $0x20] sm:$0xff]   ;;  %v889_v21 = vld [vmem:[#allocation5 + $0xe8] sm:$0xff]  }
  0x2e   :  { %770 = vmatpush3.bf16.msra.mxu0 %v874_v6  ;;  %v883_v15 = vld [vmem:[#allocation5 + $0x98] sm:$0xff]   ;;  %v887_v19 = vld [vmem:[#allocation5 + $0xa0] sm:$0xff]   ;;  %v890_v22 = vld [vmem:[#allocation5 + $0x28] sm:$0xff]   ;;  %p998_p6 = pnand %p997_p5, %p991_p2 }
  0x2f   :  { %816 = vmatpush3.bf16.msra.mxu1 %v875_v7  ;;  %771 = vmatprep.subr.bf16.mxu0 %v876_v8  ;;  %v891_v23 = vld [vmem:[#allocation5 + $0xa8] sm:$0xff]   ;;  %v892_v24 = vld [vmem:[#allocation5 + $0x70] sm:$0xff]   ;;  %v896_v28 = vld [vmem:[#allocation5 + $0x78] sm:$0xff]  }
  0x30   :  { %817 = vmatprep.subr.bf16.mxu1 %v877_v9  ;;  %v893_v25 = vld [vmem:[#allocation5 + $0xf0] sm:$0xff]   ;;  %v897_v29 = vld [vmem:[#allocation5 + $0xf8] sm:$0xff]  }
  0x31   :  { %v894_v26 = vld [vmem:[#allocation5 + $0x30] sm:$0xff]   ;;  %v898_v30 = vld [vmem:[#allocation5 + $0x38] sm:$0xff]  }
  0x32   :  { %772 = vmatpush3.bf16.msra.mxu0 %v878_v10  ;;  %v895_v27 = vld [vmem:[#allocation5 + $0xb0] sm:$0xff]   ;;  %v899_v31 = vld [vmem:[#allocation5 + $0xb8] sm:$0xff]  }
  0x33   :  { %818 = vmatpush3.bf16.msra.mxu1 %v879_v11  ;;  %773 = vmatprep.subr.bf16.mxu0 %v880_v12  ;;  %v900_v32 = vld [vmem:[#allocation2] ss:$16 sps:$4 sm:$0xff]   ;;  %v902_v33 = vld [vmem:[#allocation2 + $0x4] ss:$16 sps:$4 sm:$0xff]   ;;  %v903_v34 = vld [vmem:[#allocation2 + $0x8] ss:$16 sps:$4 sm:$0xff]  }
  0x34   :  { %819 = vmatprep.subr.bf16.mxu1 %v881_v13  ;;  %v905_v35 = vld [vmem:[#allocation2 + $0xc] ss:$16 sps:$4 sm:$0xff]   ;;  %441 = vmatprep.mubr.bf16.mxu0 %v902_v33  ;;  %v906_v36 = vld [vmem:[#allocation2 + $0x24] ss:$16 sps:$4 sm:$0xff]   ;;  %v910_v38 = vld [vmem:[#allocation2 + $0x20] ss:$16 sps:$4 sm:$0xff]  }
  0x35   :  { %513 = vmatprep.mubr.bf16.mxu1 %v905_v35  ;;  %v908_v37 = vld [vmem:[#allocation2 + $0x2c] ss:$16 sps:$4 sm:$0xff]   ;;  %v911_v39 = vld [vmem:[#allocation2 + $0x28] ss:$16 sps:$4 sm:$0xff]   ;;  %v912_v40 = vld [vmem:[#allocation2 + $0x44] ss:$16 sps:$4 sm:$0xff]  }
  0x36   :  { %774 = vmatpush3.bf16.msra.mxu0 %v882_v14  ;;  %v914_v41 = vld [vmem:[#allocation2 + $0x4c] ss:$16 sps:$4 sm:$0xff]   ;;  %v916_v42 = vld [vmem:[#allocation2 + $0x40] ss:$16 sps:$4 sm:$0xff]   ;;  %v917_v43 = vld [vmem:[#allocation2 + $0x48] ss:$16 sps:$4 sm:$0xff]  }
  0x37   :  { %820 = vmatpush3.bf16.msra.mxu1 %v883_v15  ;;  %775 = vmatprep.subr.bf16.mxu0 %v884_v16  ;;  %v918_v44 = vld [vmem:[#allocation2 + $0x64] ss:$16 sps:$4 sm:$0xff]   ;;  %v920_v45 = vld [vmem:[#allocation2 + $0x6c] ss:$16 sps:$4 sm:$0xff]   ;;  %v922_v48 = vld [vmem:[#allocation2 + $0x60] ss:$16 sps:$4 sm:$0xff]  }
  0x38   :  { %821 = vmatprep.subr.bf16.mxu1 %v885_v17  ;;  %v57_v46 = vld [vmem:[#allocation2 + $0x80] sm:$0xff]  ;;  %v58_v47 = vld [vmem:[#allocation2 + $0x88] sm:$0xff] }
  0x39   :  { %v923_v49 = vld [vmem:[#allocation2 + $0x68] ss:$16 sps:$4 sm:$0xff]   ;;  %v732_v50 = vcombine.high %v57_v46, %v57_v46  ;;  %v734_v51 = vcombine.high %v58_v47, %v58_v47  ;;  %v731_v52 = vcombine.low %v57_v46, %v57_v46  ;;  %v733_v53 = vcombine.low %v58_v47, %v58_v47 }
  0x3a   :  { %776 = vmatpush3.bf16.msra.mxu0 %v886_v18 }
  0x3b   :  { %822 = vmatpush3.bf16.msra.mxu1 %v887_v19  ;;  %777 = vmatprep.subr.bf16.mxu0 %v888_v20 }
  0x3c   :  { %823 = vmatprep.subr.bf16.mxu1 %v889_v21 }
  0x3e   :  { %778 = vmatpush3.bf16.msra.mxu0 %v890_v22 }
  0x3f   :  { %824 = vmatpush3.bf16.msra.mxu1 %v891_v23  ;;  %779 = vmatprep.subr.bf16.mxu0 %v892_v24 }
  0x40   :  { %825 = vmatprep.subr.bf16.mxu1 %v893_v25 }
  0x42   :  { %780 = vmatpush3.bf16.msra.mxu0 %v894_v26 }
  0x43   :  { %826 = vmatpush3.bf16.msra.mxu1 %v895_v27  ;;  %781 = vmatprep.subr.bf16.mxu0 %v896_v28 }
  0x44   :  { %827 = vmatprep.subr.bf16.mxu1 %v897_v29 }
  0x46   :  { %782 = vmatpush3.bf16.msra.mxu0 %v898_v30 }
  0x47   :  { %828 = vmatpush3.bf16.msra.mxu1 %v899_v31 }
  0x49   :  { %442 = vmatmul.mubr.bf16.vlgmr.msra.gmra.mrb[0].mxu0 %v900_v32 }
  0x4a   :  { %514 = vmatmul.mubr.bf16.vlgmr.msra.gmra.mrb[0].mxu1 %v903_v34  ;;  %449 = vmatprep.mubr.bf16.mxu0 %v906_v36 }
  0x4b   :  { %521 = vmatprep.mubr.bf16.mxu1 %v908_v37 }
  0x51   :  { %450 = vmatmul.mubr.bf16.gmra.mrb[4].mxu0 %v910_v38 }
  0x52   :  { %522 = vmatmul.mubr.bf16.gmra.mrb[4].mxu1 %v911_v39  ;;  %457 = vmatprep.mubr.bf16.mxu0 %v912_v40 }
  0x53   :  { %529 = vmatprep.mubr.bf16.mxu1 %v914_v41 }
  0x59   :  { %458 = vmatmul.mubr.bf16.gmra.mrb[8].mxu0 %v916_v42 }
  0x5a   :  { %530 = vmatmul.mubr.bf16.gmra.mrb[8].mxu1 %v917_v43  ;;  %465 = vmatprep.mubr.bf16.mxu0 %v918_v44 }
  0x5b   :  { %537 = vmatprep.mubr.bf16.mxu1 %v920_v45 }
  0x61   :  { %466 = vmatmul.mubr.bf16.gmra.mrb[12].mxu0 %v922_v48 }
  0x62   :  { %538 = vmatmul.mubr.bf16.gmra.mrb[12].mxu1 %v923_v49  ;;  %473 = vmatprep.mubr.bf16.mxu0 %v732_v50 }
  0x63   :  { %545 = vmatprep.mubr.bf16.mxu1 %v734_v51 }
  0x69   :  { %474 = vmatmul.mubr.bf16.gmra.mrb[16].mxu0 %v731_v52 }
  0x6a   :  { %546 = vmatmul.mubr.bf16.gmra.mrb[16].mxu1 %v733_v53 }
 0x11c   :  { %v783_v54 = vpop.f32.mrb[0].mxu0 }
 0x11d   :  { %v829_v55 = vpop.f32.mrb[0].mxu1  ;;  %v784_v56 = vpop.f32.mrb[1].mxu0 }
 0x11e   :  { %v785_v57 = vadd.f32 %v784_v56, %v783_v54  ;;  %v830_v58 = vpop.f32.mrb[1].mxu1  ;;  %v786_v59 = vpop.f32.mrb[2].mxu0 }
 0x11f   :  { %v831_v60 = vadd.f32 %v830_v58, %v829_v55  ;;  %v832_v61 = vpop.f32.mrb[2].mxu1  ;;  %v787_v62 = vpop.f32.mrb[3].mxu0 }
 0x120   :  { %v788_v63 = vadd.f32 %v787_v62, %v786_v59  ;;  %v833_v0 = vpop.f32.mrb[3].mxu1 }
 0x121   :  { %v834_v1 = vadd.f32 %v833_v0, %v832_v61  ;;  %v1068_v2 = vadd.f32 %v831_v60, %v785_v57 }
 0x123   :  { %553 = vrot.lane.b32.xlu0 %v1068_v2, %s1022_s0  ;;  %v1072_v3 = vadd.f32 %v834_v1, %v788_v63  ;;  %v571_v58 = vmul.f32 %v1068_v2, %v1068_v2 }
 0x124   :  { %v789_v4 = vpop.f32.mrb[4].mxu0 }
 0x125   :  { %v835_v5 = vpop.f32.mrb[4].mxu1  ;;  %v790_v6 = vpop.f32.mrb[5].mxu0  ;;  %v572_v62 = vmul.f32 %v1072_v3, %v1072_v3 }
 0x126   :  { %v791_v7 = vadd.f32 %v790_v6, %v789_v4  ;;  %v836_v8 = vpop.f32.mrb[5].mxu1  ;;  %v792_v9 = vpop.f32.mrb[6].mxu0 }
 0x127   :  { %v837_v10 = vadd.f32 %v836_v8, %v835_v5  ;;  %v838_v11 = vpop.f32.mrb[6].mxu1  ;;  %555 = vrot.lane.b32.xlu0 %v1072_v3, %s1022_s0  ;;  %v793_v12 = vpop.f32.mrb[7].mxu0 }
 0x128   :  { %v794_v13 = vadd.f32 %v793_v12, %v792_v9  ;;  %v839_v14 = vpop.f32.mrb[7].mxu1 }
 0x129   :  { %v840_v15 = vadd.f32 %v839_v14, %v838_v11  ;;  %v524_v16 = vadd.f32 %v837_v10, %v791_v7 }
 0x12b   :  { %557 = vrot.lane.b32.xlu1 %v524_v16, %s1022_s0  ;;  %v527_v17 = vadd.f32 %v840_v15, %v794_v13  ;;  %v573_v4 = vmul.f32 %v524_v16, %v524_v16 }
 0x12c   :  { %v795_v18 = vpop.f32.mrb[8].mxu0 }
 0x12d   :  { %v841_v19 = vpop.f32.mrb[8].mxu1  ;;  %v796_v20 = vpop.f32.mrb[9].mxu0  ;;  %v574_v8 = vmul.f32 %v527_v17, %v527_v17 }
 0x12e   :  { %v797_v21 = vadd.f32 %v796_v20, %v795_v18  ;;  %v842_v22 = vpop.f32.mrb[9].mxu1  ;;  %v798_v23 = vpop.f32.mrb[10].mxu0 }
 0x12f   :  { %v843_v24 = vadd.f32 %v842_v22, %v841_v19  ;;  %v844_v25 = vpop.f32.mrb[10].mxu1  ;;  %559 = vrot.lane.b32.xlu1 %v527_v17, %s1022_s0  ;;  %v799_v26 = vpop.f32.mrb[11].mxu0 }
 0x130   :  { %v800_v27 = vadd.f32 %v799_v26, %v798_v23  ;;  %v845_v28 = vpop.f32.mrb[11].mxu1 }
 0x131   :  { %v846_v29 = vadd.f32 %v845_v28, %v844_v25  ;;  %v532_v30 = vadd.f32 %v843_v24, %v797_v21 }
 0x133   :  { %561 = vrot.lane.b32.xlu0 %v532_v30, %s1022_s0  ;;  %v1079_v31 = vadd.f32 %v846_v29, %v800_v27  ;;  %v575_v13 = vmul.f32 %v532_v30, %v532_v30 }
 0x134   :  { %v801_v32 = vpop.f32.mrb[12].mxu0 }
 0x135   :  { %v847_v33 = vpop.f32.mrb[12].mxu1  ;;  %563 = vrot.lane.b32.xlu1 %v1079_v31, %s1022_s0  ;;  %v802_v34 = vpop.f32.mrb[13].mxu0  ;;  %v576_v17 = vmul.f32 %v1079_v31, %v1079_v31 }
 0x136   :  { %v803_v35 = vadd.f32 %v802_v34, %v801_v32  ;;  %v848_v36 = vpop.f32.mrb[13].mxu1  ;;  %v804_v37 = vpop.f32.mrb[14].mxu0 }
 0x137   :  { %v849_v38 = vadd.f32 %v848_v36, %v847_v33  ;;  %v850_v39 = vpop.f32.mrb[14].mxu1  ;;  %v805_v40 = vpop.f32.mrb[15].mxu0 }
 0x138   :  { %v806_v41 = vadd.f32 %v805_v40, %v804_v37  ;;  %v851_v42 = vpop.f32.mrb[15].mxu1 }
 0x139   :  { %v852_v43 = vadd.f32 %v851_v42, %v850_v39  ;;  %v1083_v44 = vadd.f32 %v849_v38, %v803_v35 }
 0x13b   :  { %565 = vrot.lane.b32.xlu0 %v1083_v44, %s1022_s0  ;;  %v1087_v45 = vadd.f32 %v852_v43, %v806_v41  ;;  %v577_v35 = vmul.f32 %v1083_v44, %v1083_v44 }
 0x13c   :  { %v807_v46 = vpop.f32.mrb[16].mxu0 }
 0x13d   :  { %v853_v47 = vpop.f32.mrb[16].mxu1  ;;  %567 = vrot.lane.b32.xlu1 %v1087_v45, %s1022_s0  ;;  %v808_v48 = vpop.f32.mrb[17].mxu0  ;;  %v578_v39 = vmul.f32 %v1087_v45, %v1087_v45 }
 0x13e   :  { %v809_v49 = vadd.f32 %v808_v48, %v807_v46  ;;  %v854_v50 = vpop.f32.mrb[17].mxu1  ;;  %v810_v51 = vpop.f32.mrb[18].mxu0 }
 0x13f   :  { %v855_v52 = vadd.f32 %v854_v50, %v853_v47  ;;  %v856_v53 = vpop.f32.mrb[18].mxu1  ;;  %v811_v54 = vpop.f32.mrb[19].mxu0 }
 0x140   :  { %v857_v55 = vpop.f32.mrb[19].mxu1 }
 0x141   :  { %v1091_v56 = vadd.f32 %v855_v52, %v809_v49 }
 0x143   :  { %569 = vrot.lane.b32.xlu0 %v1091_v56, %s1022_s0  ;;  %v579_v45 = vmul.f32 %v1091_v56, %v1091_v56 }
 0x195   :  { %v554_v57 = vpop.permute.xlu0 %553 }
 0x196   :  { %v580_v59 = vmul.f32 %v554_v57, %v554_v57 }
 0x198   :  { %v589_v60 = vadd.f32 %v580_v59, %v571_v58 }
 0x199   :  { %v556_v61 = vpop.permute.xlu0 %555 }
 0x19a   :  { %928 = vrsqrt.f32 %v589_v60  ;;  %v581_v63 = vmul.f32 %v556_v61, %v556_v61  ;;  %vm600_vm0 = vcmp.eq.f32.partialorder %v589_v60, inf  ;;  %v603_v14 = vand.u32 2147483648, %v589_v60 }
 0x19b   :  { %vm602_vm1 = vcmp.eq.f32.partialorder %v589_v60, 0.0 }
 0x19c   :  { %v590_v0 = vadd.f32 %v581_v63, %v572_v62 }
 0x19d   :  { %v558_v1 = vpop.permute.xlu1 %557 }
 0x19e   :  { %v582_v5 = vmul.f32 %v558_v1, %v558_v1  ;;  %930 = vrsqrt.f32 %v590_v0  ;;  %vm607_vm2 = vcmp.eq.f32.partialorder %v590_v0, inf  ;;  %v610_v25 = vand.u32 2147483648, %v590_v0 }
 0x19f   :  { %vm609_vm3 = vcmp.eq.f32.partialorder %v590_v0, 0.0 }
 0x1a0   :  { %v591_v6 = vadd.f32 %v582_v5, %v573_v4 }
 0x1a1   :  { %v560_v7 = vpop.permute.xlu1 %559 }
 0x1a2   :  { %932 = vrsqrt.f32 %v591_v6  ;;  %v583_v9 = vmul.f32 %v560_v7, %v560_v7  ;;  %vm614_vm4 = vcmp.eq.f32.partialorder %v591_v6, inf  ;;  %v617_v31 = vand.u32 2147483648, %v591_v6 }
 0x1a3   :  { %vm616_vm5 = vcmp.eq.f32.partialorder %v591_v6, 0.0 }
 0x1a4   :  { %v929_v10 = vpop.eup %928  ;;  %v592_v11 = vadd.f32 %v583_v9, %v574_v8 }
 0x1a5   :  { %v599_v2 = vmul.f32 %v929_v10, %v589_v60  ;;  %v562_v12 = vpop.permute.xlu0 %561 }
 0x1a6   :  { %v584_v15 = vmul.f32 %v562_v12, %v562_v12  ;;  %934 = vrsqrt.f32 %v592_v11  ;;  %vm621_vm6 = vcmp.eq.f32.partialorder %v592_v11, inf  ;;  %v624_v44 = vand.u32 2147483648, %v592_v11 }
 0x1a7   :  { %v601_v3 = vsel %vm600_vm0, %v589_v60, %v599_v2  ;;  %v564_v18 = vpop.permute.xlu1 %563  ;;  %vm623_vm7 = vcmp.eq.f32.partialorder %v592_v11, 0.0 }
 0x1a8   :  { %v604_v16 = vsel %vm602_vm1, %v603_v14, %v601_v3  ;;  %v1099_v19 = vadd.f32 %v584_v15, %v575_v13  ;;  %v585_v20 = vmul.f32 %v564_v18, %v564_v18  ;;  %v931_v21 = vpop.eup %930 }
 0x1a9   :  { %v661_v22 = vmax.f32 %v604_v16, 0.0  ;;  %v606_v23 = vmul.f32 %v931_v21, %v590_v0 }
 0x1aa   :  { %936 = vrsqrt.f32 %v1099_v19  ;;  %v1104_v26 = vadd.f32 %v585_v20, %v576_v17  ;;  %vm628_vm8 = vcmp.eq.f32.partialorder %v1099_v19, inf  ;;  %v631_v60 = vand.u32 2147483648, %v1099_v19 }
 0x1ab   :  { %v670_v24 = vmin.f32 %v661_v22, 10000.0  ;;  %v608_v28 = vsel %vm607_vm2, %v590_v0, %v606_v23  ;;  %vm630_vm9 = vcmp.eq.f32.partialorder %v1099_v19, 0.0 }
 0x1ac   :  { %v933_v27 = vpop.eup %932  ;;  %v611_v30 = vsel %vm609_vm3, %v610_v25, %v608_v28  ;;  %938 = vrsqrt.f32 %v1104_v26  ;;  %vm635_vm10 = vcmp.eq.f32.partialorder %v1104_v26, inf  ;;  %vm637_vm11 = vcmp.eq.f32.partialorder %v1104_v26, 0.0 }
 0x1ad   :  { %v679_v29 = vmul.f32 0.001, %v670_v24  ;;  %v613_v32 = vmul.f32 %v933_v27, %v591_v6  ;;  %v566_v33 = vpop.permute.xlu0 %565  ;;  %v662_v34 = vmax.f32 %v611_v30, 0.0 }
 0x1ae   :  { %v586_v37 = vmul.f32 %v566_v33, %v566_v33 }
 0x1af   :  { %688 = vst [vmem:[#allocation7] sm:$0xff] %v679_v29  ;;  %v615_v36 = vsel %vm614_vm4, %v591_v6, %v613_v32  ;;  %v568_v38 = vpop.permute.xlu1 %567  ;;  %v671_v40 = vmin.f32 %v662_v34, 10000.0  ;;  %v638_v6 = vand.u32 2147483648, %v1104_v26 }
 0x1b0   :  { %v618_v41 = vsel %vm616_vm5, %v617_v31, %v615_v36  ;;  %v587_v42 = vmul.f32 %v568_v38, %v568_v38  ;;  %v935_v43 = vpop.eup %934  ;;  %v595_v47 = vadd.f32 %v586_v37, %v577_v35 }
 0x1b1   :  { %v663_v46 = vmax.f32 %v618_v41, 0.0  ;;  %v680_v48 = vmul.f32 0.001, %v671_v40  ;;  %v620_v49 = vmul.f32 %v935_v43, %v592_v11 }
 0x1b2   :  { %v596_v50 = vadd.f32 %v587_v42, %v578_v39  ;;  %940 = vrsqrt.f32 %v595_v47  ;;  %vm642_vm12 = vcmp.eq.f32.partialorder %v595_v47, inf  ;;  %vm644_vm13 = vcmp.eq.f32.partialorder %v595_v47, 0.0 }
 0x1b3   :  { %v672_v51 = vmin.f32 %v663_v46, 10000.0  ;;  %689 = vst [vmem:[#allocation7 + $0x8] sm:$0xff] %v680_v48  ;;  %v622_v53 = vsel %vm621_vm6, %v592_v11, %v620_v49  ;;  %v645_v3 = vand.u32 2147483648, %v595_v47 }
 0x1b4   :  { %v937_v52 = vpop.eup %936  ;;  %942 = vrsqrt.f32 %v596_v50  ;;  %v625_v55 = vsel %vm623_vm7, %v624_v44, %v622_v53  ;;  %vm649_vm14 = vcmp.eq.f32.partialorder %v596_v50, inf  ;;  %v652_v20 = vand.u32 2147483648, %v596_v50 }
 0x1b5   :  { %v681_v54 = vmul.f32 0.001, %v672_v51  ;;  %v627_v57 = vmul.f32 %v937_v52, %v1099_v19  ;;  %v570_v58 = vpop.permute.xlu0 %569  ;;  %v664_v59 = vmax.f32 %v625_v55, 0.0  ;;  %vm651_vm15 = vcmp.eq.f32.partialorder %v596_v50, 0.0 }
 0x1b6   :  { %v588_v61 = vmul.f32 %v570_v58, %v570_v58  ;;  %v939_v62 = vpop.eup %938 }
 0x1b7   :  { %690 = vst [vmem:[#allocation7 + $0x10] sm:$0xff] %v681_v54  ;;  %v629_v63 = vsel %vm628_vm8, %v1099_v19, %v627_v57  ;;  %v673_v0 = vmin.f32 %v664_v59, 10000.0  ;;  %v634_v56 = vmul.f32 %v939_v62, %v1104_v26 }
 0x1b8   :  { %v632_v1 = vsel %vm630_vm9, %v631_v60, %v629_v63  ;;  %v597_v4 = vadd.f32 %v588_v61, %v579_v45 }
 0x1b9   :  { %v665_v5 = vmax.f32 %v632_v1, 0.0  ;;  %v682_v7 = vmul.f32 0.001, %v673_v0  ;;  %v636_v8 = vsel %vm635_vm10, %v1104_v26, %v634_v56 }
 0x1ba   :  { %944 = vrsqrt.f32 %v597_v4  ;;  %v639_v10 = vsel %vm637_vm11, %v638_v6, %v636_v8  ;;  %vm656_vm0 = vcmp.eq.f32.partialorder %v597_v4, inf  ;;  %v659_v30 = vand.u32 2147483648, %v597_v4 }
 0x1bb   :  { %v674_v9 = vmin.f32 %v665_v5, 10000.0  ;;  %691 = vst [vmem:[#allocation7 + $0x18] sm:$0xff] %v682_v7  ;;  %v666_v2 = vmax.f32 %v639_v10, 0.0  ;;  %vm658_vm1 = vcmp.eq.f32.partialorder %v597_v4, 0.0 }
 0x1bc   :  { %v941_v11 = vpop.eup %940 }
 0x1bd   :  { %v683_v12 = vmul.f32 0.001, %v674_v9  ;;  %v675_v14 = vmin.f32 %v666_v2, 10000.0  ;;  %v641_v15 = vmul.f32 %v941_v11, %v595_v47 }
 0x1be   :  { %v943_v13 = vpop.eup %942 }
 0x1bf   :  { %692 = vst [vmem:[#allocation7 + $0x20] sm:$0xff] %v683_v12  ;;  %v648_v18 = vmul.f32 %v943_v13, %v596_v50  ;;  %v684_v16 = vmul.f32 0.001, %v675_v14  ;;  %v643_v19 = vsel %vm642_vm12, %v595_v47, %v641_v15 }
 0x1c0   :  { %v646_v21 = vsel %vm644_vm13, %v645_v3, %v643_v19 }
 0x1c1   :  { %v650_v17 = vsel %vm649_vm14, %v596_v50, %v648_v18  ;;  %693 = vst [vmem:[#allocation7 + $0x28] sm:$0xff] %v684_v16  ;;  %v667_v22 = vmax.f32 %v646_v21, 0.0 }
 0x1c2   :  { %v653_v23 = vsel %vm651_vm15, %v652_v20, %v650_v17 }
 0x1c3   :  { %v668_v24 = vmax.f32 %v653_v23, 0.0  ;;  %v676_v26 = vmin.f32 %v667_v22, 10000.0 }
 0x1c4   :  { %v945_v25 = vpop.eup %944 }
 0x1c5   :  { %v677_v27 = vmin.f32 %v668_v24, 10000.0  ;;  %v655_v28 = vmul.f32 %v945_v25, %v597_v4  ;;  %v685_v29 = vmul.f32 0.001, %v676_v26 }
 0x1c7   :  { %v686_v32 = vmul.f32 0.001, %v677_v27  ;;  %v657_v33 = vsel %vm656_vm0, %v597_v4, %v655_v28  ;;  %694 = vst [vmem:[#allocation7 + $0x30] sm:$0xff] %v685_v29 }
 0x1c8   :  { %v660_v34 = vsel %vm658_vm1, %v659_v30, %v657_v33 }
 0x1c9   :  { %695 = vst [vmem:[#allocation7 + $0x38] sm:$0xff] %v686_v32  ;;  %v669_v31 = vmax.f32 %v660_v34, 0.0 }
 0x1cb   :  { %v678_v35 = vmin.f32 %v669_v31, 10000.0 }
 0x1cd   :  { %v687_v36 = vmul.f32 0.001, %v678_v35 }
 0x1cf   :  { %696 = vst [vmem:[#allocation7 + $0x40] sm:$0xff] %v687_v36 }
 0x1d0   :  { %1001 = shalt.err (!%p998_p6)
}
 0x1d1   :  { %s1002_s12 = scalar_lea.hbm %s1137_s2, 1152 }
 0x1d2   :  { %p1003_p7 = scmp.ne.s32.totalorder %s1137_s2, %s1002_s12  ;;  %p1006_p8 = scmp.lt.u32.totalorder %s1002_s12, %s1137_s2 }
 0x1d4   :  { %p1008_p9 = pnand %p1006_p8, %p1003_p7 }
 0x1d6   :  { %1011 = shalt.err (!%p1008_p9)
}
 0x1d7   :  { %s1025_s17 = smov 128   ;;  %s1026_s18 = smov 8  }
 0x1d8   :  { %708 = dma.vmem_to_hbm [thread:$0]  %s703_s8, 1152, %s1137_s2, [#allocation4], %s1025_s17, %s1025_s17, %s1026_s18  }
 0x1d9   :  { %1016 = dma.done.wait [#allocation4], 1152  }
 0x1da   :  { %1017 = vsyncadd [#allocation4], 4294966144 }
 0x1db   :  { %712 = vsyncpa [#allocation3], 1 }
 0x1dc   :  { %713 = vsyncpa [#allocation6], 1 }
 0x1dd   :  { %714 = vsyncpa [#allocation4], 1 }

</bundles_post_ra>
